<compile_context>
chip_gen: v5e
topology: v5e:2x2
jax: 0.10.0
libtpu: 0.0.40
codegen_flags: <defaults>
</compile_context>

<pallas_src>
import functools

import jax
import jax.numpy as jnp
from jax.experimental import pallas as pl
from jax.experimental.pallas import tpu as pltpu


def _round_up(n, m):
    return ((n + m - 1) // m) * m


def _lr_kernel(x_ref, w_ref, b_ref, o_ref, acc_ref, *, tk, n_features,
               w_resident):
    # x_ref:   (TM, TK) VMEM, native dtype      w_ref: (Kt,1,TK) or (1,1,TK) f32
    # b_ref:   (1, 1)   SMEM                    o_ref: (TM, 1) VMEM
    # acc_ref: (TM, 128) f32 VMEM scratch (lane-dense accumulator)
    k = pl.program_id(1)
    nk = pl.num_programs(1)

    @pl.when(k == 0)
    def _():
        acc_ref[...] = jnp.zeros_like(acc_ref)

    # This step's weight chunk: resident row indexed by k, or per-step block.
    if w_resident:
        w = w_ref[k].astype(jnp.float32)          # (1, TK)
    else:
        w = w_ref[0].astype(jnp.float32)          # (1, TK)

    x = x_ref[...].astype(jnp.float32)            # (TM, TK); cast in-kernel

    if n_features % tk != 0:
        # Ragged last feature tile: columns past n_features hold garbage HBM
        # bytes (possibly NaN/Inf) -> zero them before the multiply-accumulate.
        lane = jax.lax.broadcasted_iota(jnp.int32, (1, tk), 1)
        x = jnp.where(k * tk + lane < n_features, x, 0.0)

    xw = x * w                                    # (TM, TK), pure VPU

    # Fold TK columns into 128 lanes with static lane-aligned slices (VPU only;
    # no XLU, no narrow masked stores on the hot path).
    partial = xw[:, 0:128]
    for j in range(1, tk // 128):
        partial = partial + xw[:, j * 128:(j + 1) * 128]
    acc_ref[...] += partial

    @pl.when(k == nk - 1)
    def _():
        # One cross-lane reduce per batch tile, then bias + exact sigmoid
        # (epilogue runs once, so the exact reciprocal is essentially free).
        z = jnp.sum(acc_ref[...], axis=-1, keepdims=True) + b_ref[0, 0]
        o_ref[...] = (1.0 / (1.0 + jnp.exp(-z))).astype(o_ref.dtype)


@functools.partial(jax.jit, static_argnames=("tm", "tk"))
def lr_forward(x, w, b, *, tm=2048, tk=1024):
    """sigmoid(x @ w.T + b).

    x: (B, F) float (streamed in native dtype); w: (1, F) PyTorch nn.Linear
    layout; b: scalar / (1,) / (1, 1). Returns (B, 1) in x.dtype.
    """
    B, F = x.shape
    assert w.shape == (1, F)

    # Feature tile: multiple of 128 lanes, never larger than padded F.
    TK = min(_round_up(tk, 128), _round_up(F, 128))
    # Batch tile: multiple of 8 sublanes; keep >= 2 batch tiles when possible so
    # the "parallel" axis shards across both TensorCores on v7x.
    Bp8 = _round_up(B, 8)
    TM = min(_round_up(tm, 8), Bp8)
    if Bp8 >= 16:
        TM = min(TM, _round_up(pl.cdiv(Bp8, 2), 8))

    grid_m = pl.cdiv(B, TM)
    grid_k = pl.cdiv(F, TK)
    Bp = grid_m * TM
    Fp = grid_k * TK

    # Only the tiny weight row / bias are padded & cast in the wrapper; x itself
    # is passed through untouched (no extra HBM traffic, no dtype upcast).
    w_p = jnp.pad(w.astype(jnp.float32), ((0, 0), (0, Fp - F)))
    w_p = w_p.reshape(grid_k, 1, TK)
    b_p = jnp.asarray(b, jnp.float32).reshape(1, 1)

    # Keep the whole weight row VMEM-resident unless it is large.
    w_resident = Fp * 4 <= 4 * 1024 * 1024
    if w_resident:
        w_spec = pl.BlockSpec((grid_k, 1, TK), lambda i, k: (0, 0, 0))
    else:
        w_spec = pl.BlockSpec((1, 1, TK), lambda i, k: (k, 0, 0))

    kernel = functools.partial(
        _lr_kernel, tk=TK, n_features=F, w_resident=w_resident)

    # Scoped-VMEM budget: x double-buffered + weights + acc + out, with slack.
    # (v5e's default scoped limit is only 16 MiB; raise it explicitly.)
    x_block_bytes = TM * TK * x.dtype.itemsize
    w_vmem = 2 * (Fp if w_resident else TK) * 4
    est = 2 * x_block_bytes + w_vmem + 3 * TM * 128 * 4
    vmem_limit = max(32 * 1024 * 1024, int(est * 1.25))

    out = pl.pallas_call(
        kernel,
        out_shape=jax.ShapeDtypeStruct((Bp, 1), x.dtype),
        grid=(grid_m, grid_k),
        in_specs=[
            pl.BlockSpec((TM, TK), lambda i, k: (i, k)),           # x stream
            w_spec,                                                # weight row
            pl.BlockSpec(memory_space=pltpu.MemorySpace.SMEM),     # bias scalar
        ],
        out_specs=pl.BlockSpec((TM, 1), lambda i, k: (i, 0)),
        scratch_shapes=[pltpu.VMEM((TM, 128), jnp.float32)],
        compiler_params=pltpu.CompilerParams(
            dimension_semantics=("parallel", "arbitrary"),
            vmem_limit_bytes=vmem_limit,
        ),
    )(x, w_p, b_p)

    return out[:B]


def lr_reference(x, w, b):
    return jax.nn.sigmoid(x @ w.T + b)


if __name__ == "__main__":
    key = jax.random.PRNGKey(0)
    kx, kw, kb = jax.random.split(key, 3)

    batch = 8
    n_features = 32

    x = jax.random.normal(kx, (batch, n_features), dtype=jnp.float32)

    # nn.Linear-style init: U(-1/sqrt(F), 1/sqrt(F)); weight in PyTorch layout.
    bound = 1.0 / jnp.sqrt(jnp.float32(n_features))
    w = jax.random.uniform(kw, (1, n_features), jnp.float32, -bound, bound)
    b = jax.random.uniform(kb, (1, 1), jnp.float32, -bound, bound)

    out = lr_forward(x, w, b)
    jax.block_until_ready(out)

    ref = lr_reference(x, w, b)
    assert out.shape == (batch, 1)
    assert jnp.allclose(out, ref, atol=1e-5, rtol=1e-5), float(
        jnp.max(jnp.abs(out - ref))
    )

    print("KERNEL_OK")
</pallas_src>

<mosaic_0001>
module attributes {stable_mosaic.version = 11 : i64} {
  func.func @_lr_kernel(%arg0: i32, %arg1: i32, %arg2: memref<8x128xf32, #tpu.memory_space<vmem>>, %arg3: memref<1x1x128xf32, #tpu.memory_space<vmem>>, %arg4: memref<1x1xf32, #tpu.memory_space<smem>>, %arg5: memref<8x1xf32, #tpu.memory_space<vmem>>, %arg6: memref<8x128xf32, #tpu.memory_space<vmem>>) attributes {dimension_semantics = [#tpu.dimension_semantics<parallel>, #tpu.dimension_semantics<arbitrary>], iteration_bounds = array<i64: 1, 1>, scalar_prefetch = 0 : i64, scratch_operands = 1 : i64, tpu.core_type = #tpu.core_type<tc>, window_params = [{transform_indices = @transform_0, window_bounds = array<i64: 8, 128>}, {pipeline_mode = #tpu.pipeline_mode<synchronous>, transform_indices = @transform_1, window_bounds = array<i64: 1, 1, 128>}, {transform_indices = @transform_2, window_bounds = array<i64: 1, 1>}, {transform_indices = @transform_3, window_bounds = array<i64: 8, 1>}]} {
    %c0_i32 = arith.constant 0 : i32
    %0 = arith.cmpi eq, %arg1, %c0_i32 : i32
    %1 = arith.extui %0 : i1 to i32
    %c0_i32_0 = arith.constant 0 : i32
    %2 = arith.cmpi ne, %1, %c0_i32_0 : i32
    scf.if %2 {
      %cst_10 = arith.constant 0.000000e+00 : f32
      %25 = vector.broadcast %cst_10 : f32 to vector<8x128xf32>
      %c0_11 = arith.constant 0 : index
      %c0_12 = arith.constant 0 : index
      %26 = vector.load %arg6[%c0_11, %c0_12] : memref<8x128xf32, #tpu.memory_space<vmem>>, vector<8x128xf32>
      tpu.vector_store %arg6[%c0_11, %c0_12], %25 {strides = array<i32>} : memref<8x128xf32, #tpu.memory_space<vmem>>, vector<8x128xf32>,
    } else {
    }
    %3 = arith.index_cast %arg1 : i32 to index
    %c0 = arith.constant 0 : index
    %c0_1 = arith.constant 0 : index
    %4 = vector.load %arg3[%3, %c0, %c0_1] : memref<1x1x128xf32, #tpu.memory_space<vmem>>, vector<1x1x128xf32>
    %5 = vector.shape_cast %4 : vector<1x1x128xf32> to vector<1x128xf32>
    %c0_2 = arith.constant 0 : index
    %c0_3 = arith.constant 0 : index
    %6 = vector.load %arg2[%c0_2, %c0_3] : memref<8x128xf32, #tpu.memory_space<vmem>>, vector<8x128xf32>
    %7 = tpu.iota {dimensions = array<i32: 1>} : vector<1x128xi32>
    %c128_i32 = arith.constant 128 : i32
    %8 = arith.muli %arg1, %c128_i32 : i32
    %9 = vector.broadcast %8 : i32 to vector<1x128xi32>
    %10 = arith.addi %9, %7 : vector<1x128xi32>
    %c32_i32 = arith.constant 32 : i32
    %11 = vector.broadcast %c32_i32 : i32 to vector<1x128xi32>
    %12 = arith.cmpi slt, %10, %11 : vector<1x128xi32>
    %cst = arith.constant 0.000000e+00 : f32
    %13 = vector.shape_cast %12 : vector<1x128xi1> to vector<1x128xi1>
    %14 = vector.broadcast %13 : vector<1x128xi1> to vector<8x128xi1>
    %15 = vector.broadcast %cst : f32 to vector<8x128xf32>
    %16 = arith.select %14, %6, %15 : vector<8x128xi1>, vector<8x128xf32>
    %17 = vector.broadcast %5 : vector<1x128xf32> to vector<8x128xf32>
    %18 = arith.mulf %16, %17 : vector<8x128xf32>
    %c0_4 = arith.constant 0 : index
    %c0_5 = arith.constant 0 : index
    %19 = vector.load %arg6[%c0_4, %c0_5] : memref<8x128xf32, #tpu.memory_space<vmem>>, vector<8x128xf32>
    %20 = arith.addf %19, %18 : vector<8x128xf32>
    %c0_6 = arith.constant 0 : index
    %c0_7 = arith.constant 0 : index
    %21 = vector.load %arg6[%c0_6, %c0_7] : memref<8x128xf32, #tpu.memory_space<vmem>>, vector<8x128xf32>
    tpu.vector_store %arg6[%c0_6, %c0_7], %20 {strides = array<i32>} : memref<8x128xf32, #tpu.memory_space<vmem>>, vector<8x128xf32>,
    %c0_i32_8 = arith.constant 0 : i32
    %22 = arith.cmpi eq, %arg1, %c0_i32_8 : i32
    %23 = arith.extui %22 : i1 to i32
    %c0_i32_9 = arith.constant 0 : i32
    %24 = arith.cmpi ne, %23, %c0_i32_9 : i32
    scf.if %24 {
      %c0_10 = arith.constant 0 : index
      %c0_11 = arith.constant 0 : index
      %25 = vector.load %arg6[%c0_10, %c0_11] : memref<8x128xf32, #tpu.memory_space<vmem>>, vector<8x128xf32>
      %cst_12 = arith.constant dense<0.000000e+00> : vector<8xf32>
      %26 = vector.multi_reduction <add>, %25, %cst_12 [1] : vector<8x128xf32> to vector<8xf32>
      %27 = vector.shape_cast %26 : vector<8xf32> to vector<8x1xf32>
      %c0_13 = arith.constant 0 : index
      %c0_14 = arith.constant 0 : index
      %28 = memref.load %arg4[%c0_13, %c0_14] : memref<1x1xf32, #tpu.memory_space<smem>>
      %29 = vector.broadcast %28 : f32 to vector<8x1xf32>
      %30 = arith.addf %27, %29 : vector<8x1xf32>
      %cst_15 = arith.constant 0.000000e+00 : f32
      %31 = vector.broadcast %cst_15 : f32 to vector<8x1xf32>
      %32 = arith.subf %31, %30 : vector<8x1xf32>
      %33 = math.exp %32 : vector<8x1xf32>
      %cst_16 = arith.constant 1.000000e+00 : f32
      %34 = vector.broadcast %cst_16 : f32 to vector<8x1xf32>
      %35 = arith.addf %34, %33 : vector<8x1xf32>
      %cst_17 = arith.constant 1.000000e+00 : f32
      %36 = vector.broadcast %cst_17 : f32 to vector<8x1xf32>
      %37 = arith.divf %36, %35 : vector<8x1xf32>
      %c0_18 = arith.constant 0 : index
      %c0_19 = arith.constant 0 : index
      %38 = vector.load %arg5[%c0_18, %c0_19] : memref<8x1xf32, #tpu.memory_space<vmem>>, vector<8x1xf32>
      tpu.vector_store %arg5[%c0_18, %c0_19], %37 {strides = array<i32>} : memref<8x1xf32, #tpu.memory_space<vmem>>, vector<8x1xf32>,
    } else {
    }
    return
  }
  func.func @transform_0(%arg0: i32, %arg1: i32) -> (i32, i32) {
    %c0_i32 = arith.constant 0 : i32
    return %arg0, %arg1 : i32, i32
  }
  func.func @transform_1(%arg0: i32, %arg1: i32) -> (i32, i32, i32) {
    %c0_i32 = arith.constant 0 : i32
    %c0_i32_0 = arith.constant 0 : i32
    %c0_i32_1 = arith.constant 0 : i32
    %c0_i32_2 = arith.constant 0 : i32
    return %c0_i32, %c0_i32_0, %c0_i32_1 : i32, i32, i32
  }
  func.func @transform_2(%arg0: i32, %arg1: i32) -> (i32, i32) {
    %c0_i32 = arith.constant 0 : i32
    %c0_i32_0 = arith.constant 0 : i32
    %c0_i32_1 = arith.constant 0 : i32
    return %c0_i32, %c0_i32_0 : i32, i32
  }
  func.func @transform_3(%arg0: i32, %arg1: i32) -> (i32, i32) {
    %c0_i32 = arith.constant 0 : i32
    %c0_i32_0 = arith.constant 0 : i32
    return %arg0, %c0_i32 : i32, i32
  }
}

</mosaic_0001>

<bundles_post_ra>
// kernel: lr_forward.1
= control target key start
LH: loop header
LB: loop body
LE: loop exit
PB: predicated region body
PF: predicated region fallthrough
CT: control target
= control target key end

     0   :  { %9 = vsyncpa [#allocation5], 0  ;;  %s119_s15 = smov [#allocation4]   ;;  %s152_s0 = inlined_call_operand.hbm [shape: f32[8,32], index: 0, kind: input, shape index: {}]   ;;  %s153_s1 = inlined_call_operand.vmem [shape: f32[1,1,128], index: 1, kind: input, shape index: {}]   ;;  %s154_s2 = inlined_call_operand.<no memory space> [shape: f32[1,1], index: 2, kind: input, shape index: {}]   ;;  %s155_s3 = inlined_call_operand.vmem [shape: f32[8,1], index: 3, kind: output, shape index: {}]  }
   0x1   :  { %s15_s14 = sshll.u32 %s152_s0, 4  ;;  %s17_s16 = sshll.u32 %s119_s15, 4  ;;  %s16_s14 = int_to_ptr.hbm [resolvable:$true] %s15_s14  ;;  %s18_s16 = int_to_ptr.vmem [resolvable:$true] %s17_s16 }
   0x2   :  { %20 = dma.hbm_to_vmem [thread:$0]  %s16_s14, 128, %s18_s16, [#allocation5]  }
   0x3   :  { %117 = dma.done.wait [#allocation5], 128  }
   0x4   :  { %118 = vsyncadd [#allocation5], 4294967168  ;;  %v36_v0 = vlaneseq  ;;  %v35_v2 = vld [vmem:[#allocation4] sm:$0xff]  ;;  %v59_v6 = vstv %s154_s2  ;;  %vm80_vm4 = vcmask 7168  }
   0x5   :  { %v88_v3 = vld [vmem:[%s153_s1] ss:$0 sm:$0xff] }
   0x6   :  { %v37_v1 = vand.u32 127, %v36_v0 }
   0x8   :  { %vm41_vm0 = vcmp.lt.s32.totalorder %v37_v1, 32 }
   0x9   :  { %v44_v4 = vsel %vm41_vm0, %v35_v2, 0.0 }
   0xa   :  { %v48_v5 = vmul.f32 %v88_v3, %v44_v4 }
   0xc   :  { %56 = vadd.xlane.f32.xlu0 %v48_v5 }
  0x7f   :  { %v57_v7 = vpop.xlane.xlu0 %56 }
  0x80   :  { %v60_v8 = vadd.f32 %v59_v6, %v57_v7 }
  0x82   :  { %v61_v9 = vsub.f32 0.0, %v60_v8 }
  0x84   :  { %v62_v10 = vmul.f32 1.442695, %v61_v9 }
  0x86   :  { %89 = vpow2.f32 %v62_v10 }
  0x8c   :  { %v90_v11 = vpop.eup %89 }
  0x8d   :  { %v64_v12 = vadd.f32 1.0, %v90_v11 }
  0x8f   :  { %91 = vrcp.f32 %v64_v12  ;;  %v76_v16 = vand.u32 2147483648, %v64_v12  ;;  %v74_v18 = vand.u32 2147483647, %v64_v12  ;;  %vm70_vm2 = vweird.f32 %v64_v12 }
  0x91   :  { %v77_v20 = vor.u32 1.1754944e-38, %v76_v16  ;;  %vm75_vm5 = vcmp.eq.f32.partialorder %v74_v18, 8.507059e+37 }
  0x95   :  { %v92_v13 = vpop.eup %91 }
  0x96   :  { %v66_v14 = vmul.f32 %v92_v13, %v64_v12  ;;  %vm71_vm1 = vweird.f32 %v92_v13 }
  0x97   :  { %vm72_vm3 = vmor %vm70_vm2, %vm71_vm1 }
  0x98   :  { %v67_v15 = vsub.f32 1.0, %v66_v14 }
  0x9a   :  { %v68_v17 = vmul.f32 %v92_v13, %v67_v15 }
  0x9c   :  { %v69_v19 = vadd.f32 %v92_v13, %v68_v17 }
  0x9e   :  { %v73_v21 = vsel %vm72_vm3, %v92_v13, %v69_v19 }
  0x9f   :  { %v78_v22 = vsel %vm75_vm5, %v77_v20, %v73_v21 }
  0xa0   :  { %81 = vst.msk [vmem:[%s155_s3] sm:$0xff] %vm80_vm4, %v78_v22 }
  0xa1   :  { %86 = vsyncpa [#allocation5], 1 }

</bundles_post_ra>
